<compile_context>
chip_gen: v5e
topology: v5e:2x2
jax: 0.10.0
libtpu: 0.0.40
codegen_flags: <defaults>
</compile_context>

<pallas_src>
import jax
import jax.numpy as jnp
from jax import lax
from jax.experimental import pallas as pl
from jax.experimental.pallas import tpu as pltpu

_MIB = 1024 * 1024


def _pick_tile(dim, unit, cap):
    """Largest multiple of `unit` that divides `dim`, capped at min(cap, dim)."""
    best = unit
    t = unit
    cap = min(cap, dim)
    while t <= cap:
        if dim % t == 0:
            best = t
        t += unit
    return best


# ---------------------------------------------------------------------------
# Single-timestep kernel: fused Linear + LIF (noreset) membrane update.
# ---------------------------------------------------------------------------
def _spike_dense_kernel(x_ref, w_ref, b_ref, alpha_ref, vth_ref, mem_ref,
                        mem_out_ref, spike_out_ref, acc_ref):
    k = pl.program_id(2)

    @pl.when(k == 0)
    def _():
        # Fold the bias into the accumulator init (row broadcast, once per (i, j)).
        acc_ref[...] = jnp.broadcast_to(b_ref[...], acc_ref.shape).astype(jnp.float32)

    # x: (tm, tk), w: (tn, tk) -> contract the shared input-feature axis
    # (weight kept in native [D_out, D_in] layout; no host-side transpose).
    acc_ref[...] += lax.dot_general(
        x_ref[...], w_ref[...],
        dimension_numbers=(((1,), (1,)), ((), ())),
        preferred_element_type=jnp.float32)

    @pl.when(k == pl.num_programs(2) - 1)
    def _():
        alpha = alpha_ref[...]                                   # (1, tn) broadcast
        d_input = acc_ref[...]                                   # x @ W.T + b
        mem_new = mem_ref[...] * alpha + (1.0 - alpha) * d_input
        mem_out_ref[...] = mem_new.astype(mem_out_ref.dtype)
        spike_out_ref[...] = (mem_new - vth_ref[...] > 0.0).astype(spike_out_ref.dtype)


def spike_dense_noreset_forward(x, weight, bias, tau_m, mem, v_th,
                                *, tm=None, tn=None, tk=None,
                                compute_dtype=jnp.float32):
    """One SNN timestep (the module's forward).

    x:      [B, D_in]      input spikes
    weight: [D_out, D_in]  native nn.Linear layout (NOT transposed)
    bias:   [D_out]
    tau_m:  [D_out]
    mem:    [B, D_out]     previous membrane potential
    v_th:   scalar or [D_out] threshold (the module uses a constant vth)
    Returns (mem_new, spike), each [B, D_out] f32.
    """
    B, D_in = x.shape
    D_out, D_in_w = weight.shape
    assert D_in_w == D_in
    # TODO(synk): pad/mask ragged (non-multiple-of-(8,128)) shapes instead of asserting.
    assert B % 8 == 0 and D_in % 128 == 0 and D_out % 128 == 0

    if tm is None:
        tm = _pick_tile(B, 8, 256)
    if tk is None:
        tk = _pick_tile(D_in, 128, 1024)
    if tn is None:
        tn = _pick_tile(D_out, 128, 512)
        # Prefer >= 2 parallel (i, j) tiles so v7x's two TensorCores both get work.
        if (B // tm) * (D_out // tn) < 2 and D_out >= 256:
            tn = _pick_tile(D_out, 128, D_out // 2)
    assert B % tm == 0 and D_in % tk == 0 and D_out % tn == 0

    x = x.astype(compute_dtype)
    weight = weight.astype(compute_dtype)
    b_row = bias.astype(jnp.float32).reshape(1, D_out)
    alpha_row = jax.nn.sigmoid(tau_m.astype(jnp.float32)).reshape(1, D_out)
    vth_row = jnp.broadcast_to(
        jnp.asarray(v_th, jnp.float32).reshape(-1), (D_out,)).reshape(1, D_out)

    grid = (B // tm, D_out // tn, D_in // tk)

    # double-buffered inputs/outputs + f32 accumulator, with headroom
    est = 2 * 4 * (tm * tk + tn * tk + 3 * tm * tn + 3 * tn) + 4 * tm * tn
    vmem_limit = int(min(max(2 * est, 32 * _MIB), 48 * _MIB))

    mem_new, spike = pl.pallas_call(
        _spike_dense_kernel,
        out_shape=(jax.ShapeDtypeStruct((B, D_out), jnp.float32),
                   jax.ShapeDtypeStruct((B, D_out), jnp.float32)),
        grid_spec=pltpu.PrefetchScalarGridSpec(
            num_scalar_prefetch=0,
            grid=grid,
            in_specs=[
                pl.BlockSpec((tm, tk), lambda i, j, k: (i, k)),   # x
                pl.BlockSpec((tn, tk), lambda i, j, k: (j, k)),   # weight (native layout)
                pl.BlockSpec((1, tn), lambda i, j, k: (0, j)),    # bias row
                pl.BlockSpec((1, tn), lambda i, j, k: (0, j)),    # alpha row
                pl.BlockSpec((1, tn), lambda i, j, k: (0, j)),    # v_th row
                pl.BlockSpec((tm, tn), lambda i, j, k: (i, j)),   # mem (prev)
            ],
            out_specs=[
                pl.BlockSpec((tm, tn), lambda i, j, k: (i, j)),   # mem (new)
                pl.BlockSpec((tm, tn), lambda i, j, k: (i, j)),   # spike
            ],
            scratch_shapes=[pltpu.VMEM((tm, tn), jnp.float32)],
        ),
        compiler_params=pltpu.CompilerParams(
            dimension_semantics=("parallel", "parallel", "arbitrary"),
            vmem_limit_bytes=vmem_limit),
    )(x, weight, b_row, alpha_row, vth_row, mem)
    return mem_new, spike


# ---------------------------------------------------------------------------
# Time-fused kernel: weight tile stays resident in VMEM across all T steps;
# only x_t is streamed in and (mem_t, spike_t) streamed out. mem is carried
# in VMEM scratch across the (arbitrary, innermost) time axis.
# ---------------------------------------------------------------------------
def _spike_dense_seq_kernel(x_ref, w_ref, b_ref, alpha_ref, vth_ref, mem0_ref,
                            mem_out_ref, spike_out_ref, mem_sc):
    t = pl.program_id(1)

    @pl.when(t == 0)
    def _():
        mem_sc[...] = mem0_ref[...].astype(jnp.float32)

    d_input = lax.dot_general(
        x_ref[...], w_ref[...],
        dimension_numbers=(((1,), (1,)), ((), ())),
        preferred_element_type=jnp.float32) + b_ref[...]
    alpha = alpha_ref[...]
    mem_new = mem_sc[...] * alpha + (1.0 - alpha) * d_input
    mem_sc[...] = mem_new
    mem_out_ref[...] = mem_new.astype(mem_out_ref.dtype)
    spike_out_ref[...] = (mem_new - vth_ref[...] > 0.0).astype(spike_out_ref.dtype)


def spike_dense_noreset_sequence(x_seq, weight, bias, tau_m, mem0, v_th,
                                 *, tn=None, compute_dtype=jnp.float32):
    """Fused SNN time loop (this layer is called once per timestep in SHD).

    x_seq: [T, B, D_in]; returns (mem_seq, spike_seq), each [T, B, D_out] f32.
    """
    T, B, D_in = x_seq.shape
    D_out, D_in_w = weight.shape
    assert D_in_w == D_in
    # TODO(synk): pad/mask ragged shapes + tile D_in if the weight tile outgrows VMEM.
    assert B % 8 == 0 and D_in % 128 == 0 and D_out % 128 == 0

    if tn is None:
        tn = _pick_tile(D_out, 128, 512)
        if (D_out // tn) < 2 and D_out >= 256:          # 2 parallel N tiles for v7x
            tn = _pick_tile(D_out, 128, D_out // 2)
    assert D_out % tn == 0

    x_seq = x_seq.astype(compute_dtype)
    weight = weight.astype(compute_dtype)
    b_row = bias.astype(jnp.float32).reshape(1, D_out)
    alpha_row = jax.nn.sigmoid(tau_m.astype(jnp.float32)).reshape(1, D_out)
    vth_row = jnp.broadcast_to(
        jnp.asarray(v_th, jnp.float32).reshape(-1), (D_out,)).reshape(1, D_out)

    # Grid order (j, t): time is innermost so the W tile (index map constant in t)
    # is fetched from HBM exactly once per j tile, i.e. the whole weight is
    # streamed once total; x_seq is re-streamed only D_out//tn times.
    grid = (D_out // tn, T)

    isz = jnp.dtype(compute_dtype).itemsize
    est = (2 * (B * D_in * isz + 2 * B * tn * 4)   # streamed x_t + two outputs (dbl-buffered)
           + 2 * tn * D_in * isz                   # resident weight tile
           + 2 * (B * tn + 3 * tn) * 4             # mem0 tile + bias/alpha/vth rows
           + B * tn * 4)                           # mem carry scratch
    vmem_limit = int(min(max(2 * est, 32 * _MIB), 48 * _MIB))

    mem_seq, spike_seq = pl.pallas_call(
        _spike_dense_seq_kernel,
        out_shape=(jax.ShapeDtypeStruct((T, B, D_out), jnp.float32),
                   jax.ShapeDtypeStruct((T, B, D_out), jnp.float32)),
        grid_spec=pltpu.PrefetchScalarGridSpec(
            num_scalar_prefetch=0,
            grid=grid,
            in_specs=[
                pl.BlockSpec((None, B, D_in), lambda j, t: (t, 0, 0)),  # x_t (streamed)
                pl.BlockSpec((tn, D_in), lambda j, t: (j, 0)),          # W tile (resident over t)
                pl.BlockSpec((1, tn), lambda j, t: (0, j)),             # bias row
                pl.BlockSpec((1, tn), lambda j, t: (0, j)),             # alpha row
                pl.BlockSpec((1, tn), lambda j, t: (0, j)),             # v_th row
                pl.BlockSpec((B, tn), lambda j, t: (0, j)),             # mem0 tile
            ],
            out_specs=[
                pl.BlockSpec((None, B, tn), lambda j, t: (t, 0, j)),    # mem_t
                pl.BlockSpec((None, B, tn), lambda j, t: (t, 0, j)),    # spike_t
            ],
            scratch_shapes=[pltpu.VMEM((B, tn), jnp.float32)],
        ),
        compiler_params=pltpu.CompilerParams(
            dimension_semantics=("parallel", "arbitrary"),
            vmem_limit_bytes=vmem_limit),
    )(x_seq, weight, b_row, alpha_row, vth_row, mem0)
    return mem_seq, spike_seq


# ---------------------------------------------------------------------------
# Pure-JAX references
# ---------------------------------------------------------------------------
def _reference_step(x, weight, bias, tau_m, mem, vth_row):
    d = x @ weight.T + bias
    alpha = jax.nn.sigmoid(tau_m)[None, :]
    mem_new = mem * alpha + (1.0 - alpha) * d
    spike = (mem_new - vth_row[None, :] > 0.0).astype(jnp.float32)
    return mem_new, spike


def _reference_seq(x_seq, weight, bias, tau_m, mem0, vth_row):
    def step(mem, x):
        mem_new, spike = _reference_step(x, weight, bias, tau_m, mem, vth_row)
        return mem_new, (mem_new, spike)
    _, (mems, spikes) = lax.scan(step, mem0, x_seq)
    return mems, spikes


if __name__ == "__main__":
    # Small shapes consistent with the module (D_out split into >=2 tiles for v7x).
    B, D_in, D_out, T = 8, 256, 256, 16
    vth = 0.5
    low_m, high_m = 0.0, 4.0

    key = jax.random.PRNGKey(0)
    kx, kw, kb, kt, km = jax.random.split(key, 5)

    # deterministic synthetic parameter init (mirrors nn.Linear + uniform tau_m)
    bound = 1.0 / jnp.sqrt(D_in)
    weight = jax.random.uniform(kw, (D_out, D_in), jnp.float32, -bound, bound)
    bias = jax.random.uniform(kb, (D_out,), jnp.float32, -bound, bound)
    tau_m = jax.random.uniform(kt, (D_out,), jnp.float32, low_m, high_m)

    # set_neuron_state(batch_size): mem ~ U[0,1); v_th = vth (constant per neuron)
    mem0 = jax.random.uniform(km, (B, D_out), jnp.float32)
    vth_row = jnp.full((D_out,), vth, jnp.float32)

    # input spikes (0/1) for T timesteps
    x_seq = (jax.random.uniform(kx, (T, B, D_in), jnp.float32) > 0.7).astype(jnp.float32)
    x0 = x_seq[0]

    # --- single timestep (module.forward semantics) ---
    mem_new, spike = spike_dense_noreset_forward(x0, weight, bias, tau_m, mem0, vth_row)
    jax.block_until_ready((mem_new, spike))
    mem_ref, spike_ref = _reference_step(x0, weight, bias, tau_m, mem0, vth_row)
    assert jnp.allclose(mem_new, mem_ref, atol=1e-5, rtol=1e-5)
    near = jnp.abs(mem_ref - vth) < 1e-4          # ignore FP-boundary threshold flips
    assert jnp.all((spike == spike_ref) | near)

    # --- fused time loop (weight resident in VMEM across all T steps) ---
    mem_seq, spike_seq = spike_dense_noreset_sequence(
        x_seq, weight, bias, tau_m, mem0, vth_row)
    jax.block_until_ready((mem_seq, spike_seq))
    mem_seq_ref, spike_seq_ref = _reference_seq(x_seq, weight, bias, tau_m, mem0, vth_row)
    assert jnp.allclose(mem_seq, mem_seq_ref, atol=1e-4, rtol=1e-4)
    near_seq = jnp.abs(mem_seq_ref - vth) < 1e-4
    assert jnp.all((spike_seq == spike_seq_ref) | near_seq)

    print("KERNEL_OK")
</pallas_src>

<mosaic_0001>
module attributes {stable_mosaic.version = 11 : i64} {
  func.func @_spike_dense_kernel(%arg0: i32, %arg1: i32, %arg2: i32, %arg3: memref<8x256xf32, #tpu.memory_space<vmem>>, %arg4: memref<128x256xf32, #tpu.memory_space<vmem>>, %arg5: memref<1x128xf32, #tpu.memory_space<vmem>>, %arg6: memref<1x128xf32, #tpu.memory_space<vmem>>, %arg7: memref<1x128xf32, #tpu.memory_space<vmem>>, %arg8: memref<8x128xf32, #tpu.memory_space<vmem>>, %arg9: memref<8x128xf32, #tpu.memory_space<vmem>>, %arg10: memref<8x128xf32, #tpu.memory_space<vmem>>, %arg11: memref<8x128xf32, #tpu.memory_space<vmem>>) attributes {dimension_semantics = [#tpu.dimension_semantics<parallel>, #tpu.dimension_semantics<parallel>, #tpu.dimension_semantics<arbitrary>], iteration_bounds = array<i64: 1, 2, 1>, scalar_prefetch = 0 : i64, scratch_operands = 1 : i64, tpu.core_type = #tpu.core_type<tc>, window_params = [{transform_indices = @transform_0, window_bounds = array<i64: 8, 256>}, {transform_indices = @transform_1, window_bounds = array<i64: 128, 256>}, {transform_indices = @transform_2, window_bounds = array<i64: 1, 128>}, {transform_indices = @transform_3, window_bounds = array<i64: 1, 128>}, {transform_indices = @transform_4, window_bounds = array<i64: 1, 128>}, {transform_indices = @transform_5, window_bounds = array<i64: 8, 128>}, {transform_indices = @transform_6, window_bounds = array<i64: 8, 128>}, {transform_indices = @transform_7, window_bounds = array<i64: 8, 128>}]} {
    %c0_i32 = arith.constant 0 : i32
    %0 = arith.cmpi eq, %arg2, %c0_i32 : i32
    %1 = arith.extui %0 : i1 to i32
    %c0_i32_0 = arith.constant 0 : i32
    %2 = arith.cmpi ne, %1, %c0_i32_0 : i32
    scf.if %2 {
      %c0_10 = arith.constant 0 : index
      %c0_11 = arith.constant 0 : index
      %12 = vector.load %arg5[%c0_10, %c0_11] : memref<1x128xf32, #tpu.memory_space<vmem>>, vector<1x128xf32>
      %13 = vector.shape_cast %12 : vector<1x128xf32> to vector<1x128xf32>
      %14 = vector.broadcast %13 : vector<1x128xf32> to vector<8x128xf32>
      %c0_12 = arith.constant 0 : index
      %c0_13 = arith.constant 0 : index
      %15 = vector.load %arg11[%c0_12, %c0_13] : memref<8x128xf32, #tpu.memory_space<vmem>>, vector<8x128xf32>
      tpu.vector_store %arg11[%c0_12, %c0_13], %14 {strides = array<i32>} : memref<8x128xf32, #tpu.memory_space<vmem>>, vector<8x128xf32>,
    } else {
    }
    %c0 = arith.constant 0 : index
    %c0_1 = arith.constant 0 : index
    %3 = vector.load %arg11[%c0, %c0_1] : memref<8x128xf32, #tpu.memory_space<vmem>>, vector<8x128xf32>
    %c0_2 = arith.constant 0 : index
    %c0_3 = arith.constant 0 : index
    %4 = vector.load %arg3[%c0_2, %c0_3] : memref<8x256xf32, #tpu.memory_space<vmem>>, vector<8x256xf32>
    %c0_4 = arith.constant 0 : index
    %c0_5 = arith.constant 0 : index
    %5 = vector.load %arg4[%c0_4, %c0_5] : memref<128x256xf32, #tpu.memory_space<vmem>>, vector<128x256xf32>
    %cst = arith.constant dense<0.000000e+00> : vector<8x128xf32>
    %6 = tpu.matmul %4, %5, %cst {dimension_numbers = #tpu.dot_dimension_numbers<[1], [1], [0], [0], [0, 0, 1, 0], [], []>} : vector<8x256xf32>, vector<128x256xf32>, vector<8x128xf32> -> vector<8x128xf32>
    %7 = arith.addf %3, %6 : vector<8x128xf32>
    %c0_6 = arith.constant 0 : index
    %c0_7 = arith.constant 0 : index
    %8 = vector.load %arg11[%c0_6, %c0_7] : memref<8x128xf32, #tpu.memory_space<vmem>>, vector<8x128xf32>
    tpu.vector_store %arg11[%c0_6, %c0_7], %7 {strides = array<i32>} : memref<8x128xf32, #tpu.memory_space<vmem>>, vector<8x128xf32>,
    %c0_i32_8 = arith.constant 0 : i32
    %9 = arith.cmpi eq, %arg2, %c0_i32_8 : i32
    %10 = arith.extui %9 : i1 to i32
    %c0_i32_9 = arith.constant 0 : i32
    %11 = arith.cmpi ne, %10, %c0_i32_9 : i32
    scf.if %11 {
      %c0_10 = arith.constant 0 : index
      %c0_11 = arith.constant 0 : index
      %12 = vector.load %arg6[%c0_10, %c0_11] : memref<1x128xf32, #tpu.memory_space<vmem>>, vector<1x128xf32>
      %c0_12 = arith.constant 0 : index
      %c0_13 = arith.constant 0 : index
      %13 = vector.load %arg11[%c0_12, %c0_13] : memref<8x128xf32, #tpu.memory_space<vmem>>, vector<8x128xf32>
      %c0_14 = arith.constant 0 : index
      %c0_15 = arith.constant 0 : index
      %14 = vector.load %arg8[%c0_14, %c0_15] : memref<8x128xf32, #tpu.memory_space<vmem>>, vector<8x128xf32>
      %15 = vector.broadcast %12 : vector<1x128xf32> to vector<8x128xf32>
      %16 = arith.mulf %14, %15 : vector<8x128xf32>
      %cst_16 = arith.constant 1.000000e+00 : f32
      %17 = vector.broadcast %cst_16 : f32 to vector<1x128xf32>
      %18 = arith.subf %17, %12 : vector<1x128xf32>
      %19 = vector.broadcast %18 : vector<1x128xf32> to vector<8x128xf32>
      %20 = arith.mulf %19, %13 : vector<8x128xf32>
      %21 = arith.addf %16, %20 : vector<8x128xf32>
      %c0_17 = arith.constant 0 : index
      %c0_18 = arith.constant 0 : index
      %22 = vector.load %arg9[%c0_17, %c0_18] : memref<8x128xf32, #tpu.memory_space<vmem>>, vector<8x128xf32>
      tpu.vector_store %arg9[%c0_17, %c0_18], %21 {strides = array<i32>} : memref<8x128xf32, #tpu.memory_space<vmem>>, vector<8x128xf32>,
      %c0_19 = arith.constant 0 : index
      %c0_20 = arith.constant 0 : index
      %23 = vector.load %arg7[%c0_19, %c0_20] : memref<1x128xf32, #tpu.memory_space<vmem>>, vector<1x128xf32>
      %24 = vector.broadcast %23 : vector<1x128xf32> to vector<8x128xf32>
      %25 = arith.subf %21, %24 : vector<8x128xf32>
      %cst_21 = arith.constant 0.000000e+00 : f32
      %26 = vector.broadcast %cst_21 : f32 to vector<8x128xf32>
      %27 = arith.cmpf ogt, %25, %26 : vector<8x128xf32>
      %28 = arith.extui %27 : vector<8x128xi1> to vector<8x128xi32>
      %29 = arith.sitofp %28 : vector<8x128xi32> to vector<8x128xf32>
      %c0_22 = arith.constant 0 : index
      %c0_23 = arith.constant 0 : index
      %30 = vector.load %arg10[%c0_22, %c0_23] : memref<8x128xf32, #tpu.memory_space<vmem>>, vector<8x128xf32>
      tpu.vector_store %arg10[%c0_22, %c0_23], %29 {strides = array<i32>} : memref<8x128xf32, #tpu.memory_space<vmem>>, vector<8x128xf32>,
    } else {
    }
    return
  }
  func.func @transform_0(%arg0: i32, %arg1: i32, %arg2: i32) -> (i32, i32) {
    %c0_i32 = arith.constant 0 : i32
    return %arg0, %arg2 : i32, i32
  }
  func.func @transform_1(%arg0: i32, %arg1: i32, %arg2: i32) -> (i32, i32) {
    %c0_i32 = arith.constant 0 : i32
    return %arg1, %arg2 : i32, i32
  }
  func.func @transform_2(%arg0: i32, %arg1: i32, %arg2: i32) -> (i32, i32) {
    %c0_i32 = arith.constant 0 : i32
    %c0_i32_0 = arith.constant 0 : i32
    return %c0_i32, %arg1 : i32, i32
  }
  func.func @transform_3(%arg0: i32, %arg1: i32, %arg2: i32) -> (i32, i32) {
    %c0_i32 = arith.constant 0 : i32
    %c0_i32_0 = arith.constant 0 : i32
    return %c0_i32, %arg1 : i32, i32
  }
  func.func @transform_4(%arg0: i32, %arg1: i32, %arg2: i32) -> (i32, i32) {
    %c0_i32 = arith.constant 0 : i32
    %c0_i32_0 = arith.constant 0 : i32
    return %c0_i32, %arg1 : i32, i32
  }
  func.func @transform_5(%arg0: i32, %arg1: i32, %arg2: i32) -> (i32, i32) {
    %c0_i32 = arith.constant 0 : i32
    return %arg0, %arg1 : i32, i32
  }
  func.func @transform_6(%arg0: i32, %arg1: i32, %arg2: i32) -> (i32, i32) {
    %c0_i32 = arith.constant 0 : i32
    return %arg0, %arg1 : i32, i32
  }
  func.func @transform_7(%arg0: i32, %arg1: i32, %arg2: i32) -> (i32, i32) {
    %c0_i32 = arith.constant 0 : i32
    return %arg0, %arg1 : i32, i32
  }
}

</mosaic_0001>

<bundles_post_ra>
// kernel: tpu_custom_call.1
= control target key start
LH: loop header
LB: loop body
LE: loop exit
PB: predicated region body
PF: predicated region fallthrough
CT: control target
= control target key end

     0   :  { %s1549_s0 = inlined_call_operand.hbm [shape: f32[8,256], index: 0, kind: input, shape index: {}]   ;;  %s1550_s1 = inlined_call_operand.hbm [shape: f32[256,256], index: 1, kind: input, shape index: {}]   ;;  %s1551_s2 = inlined_call_operand.hbm [shape: f32[1,256], index: 2, kind: input, shape index: {}]   ;;  %s1552_s3 = inlined_call_operand.vmem [shape: f32[1,256], index: 3, kind: input, shape index: {}]   ;;  %s1553_s4 = inlined_call_operand.hbm [shape: f32[1,256], index: 4, kind: input, shape index: {}]   ;;  %s1554_s5 = inlined_call_operand.hbm [shape: f32[8,256], index: 5, kind: input, shape index: {}]   ;;  %s1555_s6 = inlined_call_operand.hbm [shape: f32[8,256], index: 6, kind: output, shape index: {0}]   ;;  %s1556_s7 = inlined_call_operand.hbm [shape: f32[8,256], index: 7, kind: output, shape index: {1}]  }
   0x1   :  { %1561 = sst [smem:[#allocation24_spill]] %s1549_s0 }
   0x2   :  { %1562 = sst [smem:[#allocation25_spill]] %s1550_s1 }
   0x3   :  { %1563 = sst [smem:[#allocation26_spill]] %s1551_s2 }
   0x4   :  { %1564 = sst [smem:[#allocation27_spill]] %s1553_s4 }
   0x5   :  { %13 = vsyncpa [#allocation4], 0 }
   0x6   :  { %14 = vsyncpa [#allocation7], 0 }
   0x7   :  { %16 = vsyncpa [#allocation7 + $0x1], 0 }
   0x8   :  { %17 = vsyncpa [#allocation10], 0 }
   0x9   :  { %19 = vsyncpa [#allocation10 + $0x1], 0 }
   0xa   :  { %20 = vsyncpa [#allocation5], 0 }
   0xb   :  { %22 = vsyncpa [#allocation5 + $0x1], 0 }
   0xc   :  { %23 = vsyncpa [#allocation14], 0 }
   0xd   :  { %25 = vsyncpa [#allocation14 + $0x1], 0  ;;  %s1287_s24 = smov 0   ;;  %s1289_s25 = smov 0  }
   0xe   :  { %s1291_s26 = smov 0   ;;  %s1293_s27 = smov 0  }
   0xf   :  { %s1295_s28 = smov 0   ;;  %s1297_s29 = smov 0  }
  0x10 LB: > { %1565 = sst [smem:[#allocation20_spill]] %s1229_s26  ;;  %s46_s30 = sadd.s32 1, %s1237_s28  ;;  %s1241_s29 = sphi %s1297_s29, %s31_s29   ;;  %s1237_s28 = sphi %s1295_s28, %s1586_s28   ;;  %s1233_s27 = sphi %s1293_s27, %s1585_s27   ;;  %s1229_s26 = sphi %s1291_s26, %s1581_s26   ;;  %s1225_s25 = sphi %s1289_s25, %s1584_s25   ;;  %s1221_s24 = sphi %s1287_s24, %s1583_s24  }
  0x11   : > { %1566 = sst [smem:[#allocation21_spill]] %s1241_s29  ;;  %s87_s8 = sadd.s32 1, %s1229_s26 }
  0x12   : > { %p48_p0 = scmp.ge.s32.totalorder %s46_s30, 2  ;;  %p94_p1 = scmp.ne.s32.totalorder %s1229_s26, %s1225_s25 }
  0x13   : > { %p95_p2 = scmp.eq.s32.totalorder %s1241_s29, 0  ;;  %p848_p3 = scmp.ge.s32.totalorder %s1241_s29, 2 }
  0x14   : > { %s1588_s30 = smov (%p48_p0, %s46_s30), 0  ;;  %p911_p5 = scmp.lt.s32.totalorder %s1241_s29, 2 }
  0x15   : > { %1567 = sst [smem:[#allocation22_spill]] %s1588_s30  ;;  %p1328_p4 = por %p95_p2, %p94_p1 }
  0x16   : > { %s82_s10 = ssub.s32 %s1237_s28, %s1588_s30  ;;  %s303_s11 = sand.u32 1, %s1241_s29  }
  0x17   : > { %p85_p6 = scmp.eq.s32.totalorder %s82_s10, 0  ;;  %s1337_s12 = sand.u32 1, %s1229_s26  }
  0x18   : > { %s869_s13 = sshll.u32 %s1237_s28, 8  ;;  %s849_s15 = sshll.u32 %s1337_s12, 8 }
  0x19   : > { %s1341_s14 = scalar_select %p85_p6, %s1229_s26, %s87_s8  }
  0x1a   : > { %s1570_s1 = sld [smem:[#allocation25_spill]]  ;;  %s307_s20 = scalar_lea.vmem [#allocation6], %s849_s15 }
  0x1b   : > { %1569 = sst [smem:[#allocation23_spill]] %s1341_s14  ;;  %s318_s21 = sshll.u32 %s307_s20, 4  ;;  %s319_s21 = int_to_ptr.vmem [resolvable:$true] %s318_s21 }
  0x1c   : > { %p1351_p7 = pnand %p911_p5, %p1328_p4  ;;  %s1355_s23 = scalar_lea.sflag [#allocation7], %s303_s11 }
  0x1d   : > { %s1243_s8 = smov 256   ;;  %s1244_s10 = smov 16  }
  0x1e   : > { %s1572_s4 = sld [smem:[#allocation27_spill]]  ;;  %s354_s17 = scalar_lea.vmem [#allocation9], %s1337_s12 }
  0x1f   : > { %s1365_s20 = scalar_lea.sflag [#allocation10], %s303_s11  ;;  %p100_p8 = scmp.ne.s32.totalorder %s1225_s25, %s1221_s24 }
  0x20   : > { %s315_s18 = scalar_lea.hbm %s1570_s1, %s869_s13  ;;  %s1371_s1 = sadd.s32 4294967295, %s1241_s29  }
  0x21   : > { %s316_s19 = sshll.u32 %s315_s18, 4  ;;  %s361_s18 = sshll.u32 %s354_s17, 4  ;;  %s317_s19 = int_to_ptr.hbm [resolvable:$true] %s316_s19  ;;  %s362_s18 = int_to_ptr.vmem [resolvable:$true] %s361_s18 }
  0x22   : > { %893 = dma.hbm_to_vmem [thread:$0]  (!%p1351_p7), %s317_s19, 4096, %s319_s21, %s1355_s23, %s1243_s8, %s1243_s8, %s1244_s10  }
  0x23   : > { %s845_s19 = sadd.s32 4294967294, %s1241_s29   ;;  %p101_p9 = scmp.eq.s32.totalorder %s1371_s1, 0 }
  0x24   : > { %s357_s9 = scalar_lea.hbm %s1572_s4, %s1237_s28  ;;  %p232_p10 = scmp.eq.s32.totalorder %s1371_s1, 1 }
  0x25   : > { %s359_s16 = sshll.u32 %s357_s9, 4  ;;  %p238_p11 = scmp.eq.s32.totalorder %s845_s19, 1  ;;  %s360_s16 = int_to_ptr.hbm [resolvable:$true] %s359_s16 }
  0x26   : > { %899 = dma.hbm_to_vmem [thread:$0]  (!%p1351_p7), %s360_s16, 16, %s362_s18, %s1365_s20  }
  0x27   : > { %p1380_p12 = por %p101_p9, %p100_p8  ;;  %p846_p13 = scmp.ge.s32.totalorder %s1241_s29, 1 }
  0x28   : > { %p1388_p0 = por %p232_p10, %p94_p1  ;;  %p1392_p2 = por %p238_p11, %p100_p8 }
  0x29   : > { %p273_p4 = scmp.lt.s32.totalorder %s1241_s29, 3  ;;  %s1576_s0 = sld [smem:[#allocation24_spill]] }
  0x2a   : > { %s1245_s16 = smov [#allocation3]   ;;  %s1578_s2 = sld [smem:[#allocation26_spill]] }
  0x2b   : > { %p1400_p5 = pnand %p846_p13, %p273_p4  ;;  %s292_s17 = sshll.u32 %s1245_s16, 4  ;;  %s293_s17 = int_to_ptr.vmem [resolvable:$true] %s292_s17 }
  0x2c   : > { %s331_s10 = scalar_lea.vmem [#allocation8], %s1337_s12  ;;  %s853_s30 = sshll.u32 %s1337_s12, 3 }
  0x2d   : > { %p886_p1 = pneg %p1400_p5  ;;  %s338_s13 = sshll.u32 %s331_s10, 4  ;;  %s339_s13 = int_to_ptr.vmem [resolvable:$true] %s338_s13 }
  0x2e   : > { %s854_s16 = sshll.u32 %s1237_s28, 3  ;;  %s372_s18 = scalar_lea.vmem [#allocation11], %s853_s30 }
  0x2f   : > { %s290_s15 = sshll.u32 %s1576_s0, 4  ;;  %p887_p6 = pnand %p886_p1, %p101_p9  ;;  %s291_s15 = int_to_ptr.hbm [resolvable:$true] %s290_s15 }
  0x30   : > { %s334_s4 = scalar_lea.hbm %s1578_s2, %s1237_s28  ;;  %s378_s29 = scalar_lea.hbm %s1554_s5, %s854_s16 }
  0x31   : > { %s336_s0 = sshll.u32 %s334_s4, 4  ;;  %s382_s19 = sshll.u32 %s372_s18, 4  ;;  %s337_s0 = int_to_ptr.hbm [resolvable:$true] %s336_s0  ;;  %s383_s19 = int_to_ptr.vmem [resolvable:$true] %s382_s19 }
  0x32   : > { %889 = dma.hbm_to_vmem [thread:$0]  (!%p887_p6), %s291_s15, 256, %s293_s17, [#allocation4]  }
  0x33   : > { %896 = dma.hbm_to_vmem [thread:$0]  (!%p1351_p7), %s337_s0, 16, %s339_s13, %s1355_s23  }
  0x34   : > { %s380_s2 = sshll.u32 %s378_s29, 4  ;;  %391 = sbr.rel (%p1400_p5) target bundleno = 278 (0x116), region = 44  ;;  %s381_s2 = int_to_ptr.hbm [resolvable:$true] %s380_s2 }
  0x35   : > { %902 = dma.hbm_to_vmem [thread:$0]  (!%p1351_p7), %s381_s2, 128, %s383_s19, %s1365_s20  }
  0x39   : > { %1200 = dma.done.wait (%p101_p9), [#allocation4], 256  }
  0x3a   : > { %1202 = vsyncadd (%p101_p9), [#allocation4], 4294967040  ;;  %s398_s0 = sand.u32 1, %s1371_s1   ;;  %s1432_s4 = sand.u32 1, %s1225_s25  }
  0x3b   : > { %s857_s26 = sshll.u32 %s1432_s4, 8  ;;  %s399_s29 = scalar_lea.sflag [#allocation7], %s398_s0 }
  0x3c   : > { %s1435_s30 = scalar_lea.vmem [#allocation6], %s857_s26 }
  0x3d   : > { %1204 = dma.done.wait (%p1380_p12), %s399_s29, 4112  }
  0x3e   : > { %1206 = vsyncadd (%p1380_p12), %s399_s29, 4294963184  ;;  %s411_s2 = scalar_lea.vmem [#allocation8], %s1432_s4  ;;  %s418_s12 = scalar_lea.sflag [#allocation10], %s398_s0 }
  0x3f   : > { %s420_s14 = scalar_lea.vmem [#allocation9], %s1432_s4 }
  0x40   : > { %1208 = dma.done.wait (%p1380_p12), %s418_s12, 144  }
  0x41   : > { %1210 = vsyncadd (%p1380_p12), %s418_s12, 4294967152  ;;  %v531_v0 = vld [vmem:[%s1435_s30 + $0xf0] sm:$0xff]  ;;  %v532_v1 = vld [vmem:[%s1435_s30 + $0xf8] sm:$0xff]  ;;  %p486_p7 = scmp.lt.s32.totalorder %s1233_s27, 1  ;;  %s1485_s11 = sshll.u32 %s1432_s4, 3 }
  0x42   : > { %533 = vmatpush.xpose.msra.mxu0 %v531_v0  ;;  %553 = vmatpush.xpose.msra.mxu1 %v532_v1  ;;  %v529_v2 = vld [vmem:[%s1435_s30 + $0xe0] sm:$0xff]  ;;  %v530_v3 = vld [vmem:[%s1435_s30 + $0xe8] sm:$0xff]  ;;  %v527_v4 = vld [vmem:[%s1435_s30 + $0xd0] sm:$0xff]  ;;  %s864_s15 = sshll.u32 %s1233_s27, 3  ;;  %s430_s9 = scalar_lea.vmem [#allocation11], %s1485_s11 }
  0x43   : > { %v528_v5 = vld [vmem:[%s1435_s30 + $0xd8] sm:$0xff]  ;;  %v525_v6 = vld [vmem:[%s1435_s30 + $0xc0] sm:$0xff]  ;;  %v526_v7 = vld [vmem:[%s1435_s30 + $0xc8] sm:$0xff]  ;;  %s487_s1 = scalar_select %p486_p7, %s1233_s27, 1 }
  0x44   : > { %v523_v8 = vld [vmem:[%s1435_s30 + $0xb0] sm:$0xff]  ;;  %v524_v9 = vld [vmem:[%s1435_s30 + $0xb8] sm:$0xff]  ;;  %v521_v10 = vld [vmem:[%s1435_s30 + $0xa0] sm:$0xff]  ;;  %s619_s13 = scalar_lea.hbm %s1555_s6, %s864_s15  ;;  %s475_s16 = scalar_lea.vmem [#allocation12], %s1485_s11 }
  0x45   : > { %v522_v11 = vld [vmem:[%s1435_s30 + $0xa8] sm:$0xff]  ;;  %v519_v12 = vld [vmem:[%s1435_s30 + $0x90] sm:$0xff]  ;;  %v520_v13 = vld [vmem:[%s1435_s30 + $0x98] sm:$0xff]  ;;  %s488_s20 = scalar_lea.vmem %s1552_s3, %s487_s1  ;;  %s621_s27 = sshll.u32 %s475_s16, 4  ;;  %s622_s27 = int_to_ptr.vmem [resolvable:$true] %s621_s27 }
  0x46   : > { %534 = vmatpush.xpose.msra.mxu0 %v529_v2  ;;  %554 = vmatpush.xpose.msra.mxu1 %v530_v3  ;;  %v517_v14 = vld [vmem:[%s1435_s30 + $0x80] sm:$0xff]  ;;  %v518_v15 = vld [vmem:[%s1435_s30 + $0x88] sm:$0xff]  ;;  %v515_v16 = vld [vmem:[%s1435_s30 + $0x70] sm:$0xff]  ;;  %s623_s18 = sshll.u32 %s619_s13, 4  ;;  %s635_s26 = scalar_lea.hbm %s1556_s7, %s864_s15  ;;  %s624_s18 = int_to_ptr.hbm [resolvable:$true] %s623_s18 }
  0x47   : > { %v516_v17 = vld [vmem:[%s1435_s30 + $0x78] sm:$0xff]  ;;  %v513_v18 = vld [vmem:[%s1435_s30 + $0x60] sm:$0xff]  ;;  %v514_v19 = vld [vmem:[%s1435_s30 + $0x68] sm:$0xff]  ;;  %s482_s29 = scalar_lea.vmem [#allocation13], %s1485_s11  ;;  %s602_s12 = scalar_lea.sflag [#allocation5], %s1432_s4 }
  0x48   : > { %v511_v20 = vld [vmem:[%s1435_s30 + $0x50] sm:$0xff]  ;;  %v512_v21 = vld [vmem:[%s1435_s30 + $0x58] sm:$0xff]  ;;  %v509_v22 = vld [vmem:[%s1435_s30 + $0x40] sm:$0xff]  ;;  %s1133_s1 = sshra.s32 %s624_s18, 4  ;;  %s1134_s1 = int_to_ptr.hbm [resolvable:$true] %s1133_s1 }
  0x49   : > { %v510_v23 = vld [vmem:[%s1435_s30 + $0x48] sm:$0xff]  ;;  %v507_v24 = vld [vmem:[%s1435_s30 + $0x30] sm:$0xff]  ;;  %v508_v25 = vld [vmem:[%s1435_s30 + $0x38] sm:$0xff]  ;;  %s1135_s22 = scalar_lea.hbm %s1134_s1, 8  ;;  %p1140_p11 = scmp.lt.s32.totalorder %s1134_s1, %s1555_s6 }
  0x4a   : > { %535 = vmatpush.xpose.msra.mxu0 %v527_v4  ;;  %555 = vmatpush.xpose.msra.mxu1 %v528_v5  ;;  %v505_v26 = vld [vmem:[%s1435_s30 + $0x20] sm:$0xff]  ;;  %v506_v27 = vld [vmem:[%s1435_s30 + $0x28] sm:$0xff]  ;;  %v503_v28 = vld [vmem:[%s1435_s30 + $0x10] sm:$0xff]  ;;  %p1136_p8 = scmp.ne.s32.totalorder %s1134_s1, %s1135_s22 }
  0x4b   : > { %v504_v29 = vld [vmem:[%s1435_s30 + $0x18] sm:$0xff]  ;;  %v501_v30 = vld [vmem:[%s1435_s30] sm:$0xff]  ;;  %v502_v31 = vld [vmem:[%s1435_s30 + $0x8] sm:$0xff]  ;;  %s1501_s30 = sshll.u32 %s482_s29, 4  ;;  %s638_s30 = int_to_ptr.vmem [resolvable:$true] %s1501_s30 }
  0x4c   : > { %v499_v32 = vld [vmem:[#allocation3] sm:$0xff]  ;;  %v500_v33 = vld [vmem:[#allocation3 + $0x8] sm:$0xff]  ;;  %p1137_p9 = pnand %p1136_p8, %p1388_p0 }
  0x4d   : > { %v578_v34 = vld [vmem:[%s488_s20] sm:$0x1] }
  0x4e   : > { %536 = vmatpush.xpose.msra.mxu0 %v525_v6  ;;  %556 = vmatpush.xpose.msra.mxu1 %v526_v7  ;;  %v585_v35 = vsub.f32 1.0, %v578_v34  ;;  %v966_v36 = vld [vmem:[%s411_s2] ss:$0 sm:$0xff]  ;;  %s639_s2 = sshll.u32 %s635_s26, 4  ;;  %p1138_p10 = pneg %p1137_p9  ;;  %s640_s2 = int_to_ptr.hbm [resolvable:$true] %s639_s2 }
  0x4f   : > { %v967_v37 = vld [vmem:[%s488_s20] ss:$0 sm:$0xff]  ;;  %s1139_s20 = scalar_lea.hbm %s1555_s6, 16 }
  0x50   : > { %v580_v40 = vld [vmem:[%s430_s9] sm:$0xff]  ;;  %v587_v42 = vperm.slane %v585_v35, 0  ;;  %p1141_p12 = scmp.lt.s32.totalorder %s1139_s20, %s1135_s22 }
  0x51   : > { %v584_v44 = vmul.f32 %v967_v37, %v580_v40  ;;  %v968_v46 = vld [vmem:[%s420_s14] ss:$0 sm:$0xff] }
  0x52   : > { %537 = vmatpush.xpose.msra.mxu0 %v523_v8  ;;  %557 = vmatpush.xpose.msra.mxu1 %v524_v9  ;;  %p1142_p13 = por %p1141_p12, %p1140_p11 }
  0x54   : > { %p1143_p4 = pnand %p1142_p13, %p1138_p10 }
  0x56   : > { %538 = vmatpush.xpose.msra.mxu0 %v521_v10  ;;  %558 = vmatpush.xpose.msra.mxu1 %v522_v11 }
  0x5a   : > { %539 = vmatpush.xpose.msra.mxu0 %v519_v12  ;;  %559 = vmatpush.xpose.msra.mxu1 %v520_v13 }
  0x5e   : > { %540 = vmatpush.xpose.msra.mxu0 %v517_v14  ;;  %560 = vmatpush.xpose.msra.mxu1 %v518_v15 }
  0x62   : > { %541 = vmatpush.xpose.msra.mxu0 %v515_v16  ;;  %561 = vmatpush.xpose.msra.mxu1 %v516_v17 }
  0x66   : > { %542 = vmatpush.xpose.msra.mxu0 %v513_v18  ;;  %562 = vmatpush.xpose.msra.mxu1 %v514_v19 }
  0x6a   : > { %543 = vmatpush.xpose.msra.mxu0 %v511_v20  ;;  %563 = vmatpush.xpose.msra.mxu1 %v512_v21 }
  0x6e   : > { %544 = vmatpush.xpose.msra.mxu0 %v509_v22  ;;  %564 = vmatpush.xpose.msra.mxu1 %v510_v23 }
  0x72   : > { %545 = vmatpush.xpose.msra.mxu0 %v507_v24  ;;  %565 = vmatpush.xpose.msra.mxu1 %v508_v25 }
  0x76   : > { %546 = vmatpush.xpose.msra.mxu0 %v505_v26  ;;  %566 = vmatpush.xpose.msra.mxu1 %v506_v27 }
  0x7a   : > { %547 = vmatpush.xpose.msra.mxu0 %v503_v28  ;;  %567 = vmatpush.xpose.msra.mxu1 %v504_v29 }
  0x7e   : > { %548 = vmatpush.xpose.msra.mxu0 %v501_v30  ;;  %568 = vmatpush.xpose.msra.mxu1 %v502_v31 }
  0x81   : > { %549 = vmatmul.f32.vlgmr.msra.gmra.mxu0 %v499_v32  ;;  %569 = vmatmul.f32.vlgmr.msra.gmra.mxu1 %v500_v33 }
  0xfe   : > { %v550_v38 = vpop.f32.mrf.mxu0  ;;  %v570_v39 = vpop.f32.mrf.mxu1 }
  0xff   : > { %v571_v41 = vadd.f32 %v570_v39, %v550_v38 }
 0x101   : > { %v573_v43 = vadd.f32 %v966_v36, %v571_v41 }
 0x103   : > { %v589_v45 = vmul.f32 %v587_v42, %v573_v43 }
 0x105   : > { %v590_v47 = vadd.f32 %v589_v45, %v584_v44 }
 0x107   : > { %v596_v48 = vsub.f32 %v590_v47, %v968_v46  ;;  %591 = vst [vmem:[%s475_s16] sm:$0xff] %v590_v47 }
 0x108   : > { %1146 = shalt.err (!%p1143_p4)
}
 0x109   : > { %882 = dma.vmem_to_hbm [thread:$0]  (%p1388_p0), %s622_s27, 128, %s624_s18, %s602_s12   ;;  %vm597_vm0 = vcmp.gt.f32.partialorder %v596_v48, 0.0  ;;  %v1246_v49 = vmov 0.0  }
 0x10a   : > { %v861_v50 = vsel %vm597_vm0, 1.0, %v1246_v49  ;;  %s607_s11 = scalar_lea.sflag [#allocation14], %s1432_s4  ;;  %s1161_s17 = sshra.s32 %s640_s2, 4  ;;  %s1162_s17 = int_to_ptr.hbm [resolvable:$true] %s1161_s17 }
 0x10b   : > { %600 = vst [vmem:[%s482_s29] sm:$0xff] %v861_v50  ;;  %s1163_s10 = scalar_lea.hbm %s1162_s17, 8  ;;  %s1167_s19 = scalar_lea.hbm %s1556_s7, 16 }
 0x10c   : > { %p1164_p5 = scmp.ne.s32.totalorder %s1162_s17, %s1163_s10  ;;  %p1168_p7 = scmp.lt.s32.totalorder %s1162_s17, %s1556_s7 }
 0x10d   : > { %p1169_p8 = scmp.lt.s32.totalorder %s1167_s19, %s1163_s10 }
 0x10e   : > { %p1165_p1 = pnand %p1164_p5, %p1388_p0 }
 0x10f   : > { %p1170_p9 = por %p1169_p8, %p1168_p7 }
 0x110   : > { %p1166_p6 = pneg %p1165_p1 }
 0x112   : > { %p1171_p10 = pnand %p1170_p9, %p1166_p6 }
 0x114   : > { %1174 = shalt.err (!%p1171_p10)
}
 0x115   : > { %883 = dma.vmem_to_hbm [thread:$0]  (%p1388_p0), %s638_s30, 128, %s640_s2, %s607_s11  }
 0x116 PF: > { %s1579_s4 = sld [smem:[#allocation21_spill]]  ;;  %s651_s18 = sand.u32 1, %s1221_s24  }
 0x117   : > { %p904_p11 = pnand %p848_p3, %p1392_p2  ;;  %s652_s26 = scalar_lea.sflag [#allocation5], %s651_s18 }
 0x119   : > { %p905_p12 = pneg %p904_p11 }
 0x11b   : > { %1212 = dma.done.wait (%p905_p12), %s652_s26, 128  }
 0x11c   : > { %1214 = vsyncadd (%p905_p12), %s652_s26, 4294967168  ;;  %s662_s29 = scalar_lea.sflag [#allocation14], %s651_s18 }
 0x11d   : > { %1216 = dma.done.wait (%p905_p12), %s662_s29, 128  }
 0x11e   : > { %1218 = vsyncadd (%p905_p12), %s662_s29, 4294967168  ;;  %s31_s29 = sadd.s32 1, %s1579_s4   ;;  %s1580_s21 = sld [smem:[#allocation20_spill]] }
 0x11f   : > { %p28_p13 = scmp.ge.s32.totalorder %s31_s29, 4   ;;  %s1581_s26 = sld [smem:[#allocation23_spill]] }
 0x120   : > { %s1582_s30 = sld [smem:[#allocation22_spill]]  ;;  %s1583_s24 = smov %s1225_s25 }
 0x121   : > { %s1585_s27 = smov %s1237_s28 }
 0x122   :  { %30 = sbr.rel (!%p28_p13) target bundleno = 16 (0x10), region = 158 }
 0x124   : > { %s1584_s25 = smov %s1580_s21 }
 0x126   : > { %s1586_s28 = smov %s1582_s30 }
 0x127   :  { %668 = vsyncpa [#allocation4], 1 }
 0x128   :  { %670 = vsyncpa [#allocation4 + $0x1], 1 }
 0x129   :  { %671 = vsyncpa [#allocation7], 1 }
 0x12a   :  { %673 = vsyncpa [#allocation7 + $0x1], 1 }
 0x12b   :  { %674 = vsyncpa [#allocation10], 1 }
 0x12c   :  { %676 = vsyncpa [#allocation10 + $0x1], 1 }
 0x12d   :  { %677 = vsyncpa [#allocation5], 1 }
 0x12e   :  { %679 = vsyncpa [#allocation5 + $0x1], 1 }
 0x12f   :  { %680 = vsyncpa [#allocation14], 1 }
 0x130   :  { %682 = vsyncpa [#allocation14 + $0x1], 1 }

</bundles_post_ra>
